<compile_context>
chip_gen: v7x
topology: tpu7x:2x2x1
jax: 0.10.0
libtpu: 0.0.40
codegen_flags: <defaults>
</compile_context>

<pallas_src>
from functools import partial

import numpy as np
import jax
import jax.numpy as jnp
from jax import lax
from jax.experimental import pallas as pl
from jax.experimental.pallas import tpu as pltpu


def _round_up(x, m):
    return ((x + m - 1) // m) * m


# ---------------------------------------------------------------------------
# Kernel A (main path): two-hot MXU gather for one tile of output rows.
# ---------------------------------------------------------------------------
def _pool_mxu_kernel(idx_ref, x_ref, out_ref):
    """idx_ref: VMEM [te, 2] int32 (tile-local pairs)
       x_ref  : VMEM [n_pad, f_pad] resident node table
       out_ref: VMEM [te, f_pad]   output tile (node copies + pooled rows)."""
    te = out_ref.shape[0]
    n_pad = x_ref.shape[0]

    cols = lax.broadcasted_iota(jnp.int32, (te, n_pad), 1)
    i0 = idx_ref[:, 0:1]                      # [te, 1]
    i1 = idx_ref[:, 1:2]                      # [te, 1]
    # Two-hot selection matrix; a self pair (i, i) yields a 2.0 -> 0.5*2*x == x.
    s = (cols == i0).astype(x_ref.dtype) + (cols == i1).astype(x_ref.dtype)

    acc = jnp.dot(s, x_ref[...], preferred_element_type=jnp.float32)
    out_ref[...] = (0.5 * acc).astype(out_ref.dtype)


# ---------------------------------------------------------------------------
# Kernel B (fallback for large node tables): scalar gather loop, batched stores.
# ---------------------------------------------------------------------------
def _pool_gather_kernel(idx_ref, x_ref, out_ref, *, te):
    """idx_ref: SMEM [2*te] int32, tile-local flattened (i0, i1) pairs
       x_ref  : VMEM [n_pad, f_pad] resident node table
       out_ref: VMEM [te, f_pad]."""

    def body(s, carry):
        e0 = pl.multiple_of(s * 8, 8)
        rows = []
        for r in range(8):                     # unrolled sub-block of 8 rows
            i0 = idx_ref[2 * (e0 + r)]
            i1 = idx_ref[2 * (e0 + r) + 1]
            rows.append(x_ref[pl.ds(i0, 1), :] + x_ref[pl.ds(i1, 1), :])
        # One sublane-dense [8, f_pad] store per 8 rows (vst-slot friendly).
        out_ref[pl.ds(e0, 8), :] = 0.5 * jnp.concatenate(rows, axis=0)
        return carry

    lax.fori_loop(0, te // 8, body, 0, unroll=2)


# ---------------------------------------------------------------------------
# Wrapper
# ---------------------------------------------------------------------------
def graph_pooling(inputs, pool_idx, *, te=None, onehot_max_nodes=4096):
    """inputs: [N, F] float; pool_idx: [E, 2] int.  Returns [N+E, F]."""
    n_nodes, feat = int(inputs.shape[0]), int(inputs.shape[1])
    n_edges = int(pool_idx.shape[0])
    dtype = inputs.dtype
    itemsize = jnp.dtype(dtype).itemsize

    # Lane-dense feature dim / sublane-aligned node count.
    f_pad = _round_up(max(feat, 1), 128)
    n_pad = _round_up(max(n_nodes, 1), 8)
    n_rows = n_nodes + n_edges              # full concatenated output rows

    # Generation-aware VMEM budget (128 MiB v5e/v6e, 64 MiB v7x), with headroom.
    try:
        vmem_cap = int(pltpu.get_tpu_info().vmem_capacity_bytes)
    except Exception:
        vmem_cap = 64 << 20                 # conservative (v7x)
    vmem_budget = (vmem_cap * 7) // 8

    # --- tile-size selection --------------------------------------------------
    use_mxu = n_pad <= int(onehot_max_nodes)
    if te is None:
        te = 1024                           # sweep-informed default (512–2048)
    te = max(8, (int(te) // 8) * 8)
    # cap the double-buffered output tile
    out_tile_cap = ((vmem_budget // 8) // (f_pad * itemsize)) // 8 * 8
    te = max(8, min(te, out_tile_cap))
    if use_mxu:
        # cap the two-hot S[te, n_pad] (+ iota) scratch to ~8 MiB
        s_cap = ((8 << 20) // (n_pad * (4 + itemsize))) // 8 * 8
        te = max(8, min(te, s_cap))
    # keep >= 2 tiles when there is enough work (v7x megacore needs >= 2 steps)
    r_pad8 = _round_up(n_rows, 8)
    if te >= r_pad8 and r_pad8 > 8:
        te = _round_up(r_pad8 // 2, 8)
    te = min(te, r_pad8)
    n_tiles = -(-n_rows // te)
    r_pad = n_tiles * te

    # --- VMEM accounting / residency decision ---------------------------------
    x_bytes = n_pad * f_pad * itemsize
    out_bufs = 2 * te * f_pad * itemsize
    idx_bufs = 2 * te * 128 * 4 if use_mxu else 0       # [te,2] int32 lane-pads to 128
    temps = te * n_pad * (4 + itemsize) * 2 if use_mxu else (1 << 20)
    fixed = out_bufs + idx_bufs + temps + (2 << 20)

    if 2 * x_bytes + fixed <= vmem_budget:
        x_single_buffer = False
        need = 2 * x_bytes + fixed
    elif x_bytes + fixed <= vmem_budget:
        # Constant-index block never needs re-fetching; single-buffer it to fit.
        x_single_buffer = True
        need = x_bytes + fixed
    else:
        # Node table cannot stay VMEM-resident on this generation.
        # TODO(synk): HBM-resident node table with manual double-buffered
        #             make_async_copy row gather (paged-attention style).
        add = 0.5 * (inputs[pool_idx[:, 0]] + inputs[pool_idx[:, 1]])
        return jnp.concatenate([inputs, add.astype(dtype)], axis=0)

    vmem_limit = int(min(max(need, 32 << 20), vmem_budget))

    # --- padded operands -------------------------------------------------------
    x = inputs
    if (n_pad, f_pad) != (n_nodes, feat):
        x = jnp.pad(inputs, ((0, n_pad - n_nodes), (0, f_pad - feat)))

    # Unified index table: N self pairs (node copies) followed by the pooled edges.
    # Indices are clamped so untrusted/padded entries can never read OOB VMEM
    # (note: PyTorch would raise on OOB indices; we remap instead).
    self_idx = jnp.arange(n_nodes, dtype=jnp.int32)
    idx_all = jnp.concatenate(
        [jnp.stack([self_idx, self_idx], axis=1),
         jnp.clip(pool_idx.astype(jnp.int32), 0, n_nodes - 1)],
        axis=0)                                            # [n_rows, 2]

    if x_single_buffer:
        x_spec = pl.BlockSpec((n_pad, f_pad), lambda i: (0, 0),
                              pipeline_mode=pl.Buffered(1))
    else:
        x_spec = pl.BlockSpec((n_pad, f_pad), lambda i: (0, 0))

    if use_mxu:
        idx_pad = jnp.zeros((r_pad, 2), jnp.int32).at[:n_rows].set(idx_all)
        out_padded = pl.pallas_call(
            _pool_mxu_kernel,
            out_shape=jax.ShapeDtypeStruct((r_pad, f_pad), dtype),
            grid_spec=pltpu.PrefetchScalarGridSpec(
                num_scalar_prefetch=0,
                grid=(n_tiles,),
                in_specs=[
                    pl.BlockSpec((te, 2), lambda i: (i, 0)),   # per-tile index pairs
                    x_spec,                                     # resident node table
                ],
                out_specs=pl.BlockSpec((te, f_pad), lambda i: (i, 0)),
            ),
            compiler_params=pltpu.CompilerParams(
                dimension_semantics=("parallel",),
                vmem_limit_bytes=vmem_limit,
            ),
        )(idx_pad, x)
    else:
        # Large node table (still VMEM-resident): scalar gather, per-tile SMEM indices.
        idx_flat = jnp.zeros((2 * r_pad,), jnp.int32).at[: 2 * n_rows].set(
            idx_all.reshape(-1))
        out_padded = pl.pallas_call(
            partial(_pool_gather_kernel, te=te),
            out_shape=jax.ShapeDtypeStruct((r_pad, f_pad), dtype),
            grid_spec=pltpu.PrefetchScalarGridSpec(
                num_scalar_prefetch=0,
                grid=(n_tiles,),
                in_specs=[
                    pl.BlockSpec((2 * te,), lambda i: (i,),
                                 memory_space=pltpu.MemorySpace.SMEM),
                    x_spec,
                ],
                out_specs=pl.BlockSpec((te, f_pad), lambda i: (i, 0)),
            ),
            compiler_params=pltpu.CompilerParams(
                dimension_semantics=("parallel",),
                vmem_limit_bytes=vmem_limit,
            ),
        )(idx_flat, x)

    # Single row/column slice at the very end (padded, lane-dense layout is kept
    # through the whole computation).
    return out_padded[:n_rows, :feat]


def graph_pooling_ref(inputs, pool_idx):
    """Pure-JAX reference matching the PyTorch forward."""
    gathered = inputs[pool_idx]                 # [E, 2, F]
    add_feat = 0.5 * jnp.sum(gathered, axis=1)  # [E, F]
    return jnp.concatenate([inputs, add_feat], axis=0)


if __name__ == "__main__":
    key = jax.random.PRNGKey(0)

    # Case 1: small, feature dim < 128 (padding path), single chip.
    N1, F1, E1 = 16, 32, 8
    k1, k2, k3, k4, key = jax.random.split(key, 5)
    x1 = jax.random.normal(k1, (N1, F1), dtype=jnp.float32)
    idx1 = jax.random.randint(k2, (E1, 2), 0, N1, dtype=jnp.int32)
    out1 = jax.block_until_ready(graph_pooling(x1, idx1))
    ref1 = graph_pooling_ref(x1, idx1)
    np.testing.assert_allclose(np.asarray(out1), np.asarray(ref1), rtol=1e-5, atol=1e-5)
    assert out1.shape == (N1 + E1, F1)

    # Case 2: non-aligned N / F / E exercising multi-tile grid + row/col padding.
    N2, F2, E2 = 50, 96, 300
    x2 = jax.random.normal(k3, (N2, F2), dtype=jnp.float32)
    idx2 = jax.random.randint(k4, (E2, 2), 0, N2, dtype=jnp.int32)
    out2 = jax.block_until_ready(graph_pooling(x2, idx2))
    ref2 = graph_pooling_ref(x2, idx2)
    np.testing.assert_allclose(np.asarray(out2), np.asarray(ref2), rtol=1e-5, atol=1e-5)
    assert out2.shape == (N2 + E2, F2)

    print("KERNEL_OK")
</pallas_src>

<mosaic_0001>
module attributes {stable_mosaic.version = 11 : i64} {
  func.func @_pool_mxu_kernel(%arg0: i32, %arg1: memref<16x2xi32, #tpu.memory_space<vmem>>, %arg2: memref<16x128xf32, #tpu.memory_space<vmem>>, %arg3: memref<16x128xf32, #tpu.memory_space<vmem>>) attributes {dimension_semantics = [#tpu.dimension_semantics<parallel>], iteration_bounds = array<i64: 2>, scalar_prefetch = 0 : i64, scratch_operands = 0 : i64, tpu.core_type = #tpu.core_type<tc>, window_params = [{transform_indices = @transform_0, window_bounds = array<i64: 16, 2>}, {pipeline_mode = #tpu.pipeline_mode<synchronous>, transform_indices = @transform_1, window_bounds = array<i64: 16, 128>}, {transform_indices = @transform_2, window_bounds = array<i64: 16, 128>}]} {
    %0 = tpu.iota {dimensions = array<i32: 1>} : vector<16x16xi32>
    %c0 = arith.constant 0 : index
    %c0_0 = arith.constant 0 : index
    %1 = vector.load %arg1[%c0, %c0_0] : memref<16x2xi32, #tpu.memory_space<vmem>>, vector<16x1xi32>
    %c0_1 = arith.constant 0 : index
    %c1 = arith.constant 1 : index
    %2 = vector.load %arg1[%c0_1, %c1] : memref<16x2xi32, #tpu.memory_space<vmem>>, vector<16x1xi32>
    %3 = vector.broadcast %1 : vector<16x1xi32> to vector<16x16xi32>
    %4 = arith.cmpi eq, %0, %3 : vector<16x16xi32>
    %5 = arith.extui %4 : vector<16x16xi1> to vector<16x16xi32>
    %6 = arith.sitofp %5 : vector<16x16xi32> to vector<16x16xf32>
    %7 = vector.broadcast %2 : vector<16x1xi32> to vector<16x16xi32>
    %8 = arith.cmpi eq, %0, %7 : vector<16x16xi32>
    %9 = arith.extui %8 : vector<16x16xi1> to vector<16x16xi32>
    %10 = arith.sitofp %9 : vector<16x16xi32> to vector<16x16xf32>
    %11 = arith.addf %6, %10 : vector<16x16xf32>
    %c0_2 = arith.constant 0 : index
    %c0_3 = arith.constant 0 : index
    %12 = vector.load %arg2[%c0_2, %c0_3] : memref<16x128xf32, #tpu.memory_space<vmem>>, vector<16x128xf32>
    %cst = arith.constant dense<0.000000e+00> : vector<16x128xf32>
    %13 = tpu.matmul %11, %12, %cst {dimension_numbers = #tpu.dot_dimension_numbers<[1], [0], [0], [1], [0, 0, 1, 1], [], []>} : vector<16x16xf32>, vector<16x128xf32>, vector<16x128xf32> -> vector<16x128xf32>
    %cst_4 = arith.constant 5.000000e-01 : f32
    %14 = vector.broadcast %cst_4 : f32 to vector<16x128xf32>
    %15 = arith.mulf %14, %13 : vector<16x128xf32>
    %c0_5 = arith.constant 0 : index
    %c0_6 = arith.constant 0 : index
    %16 = vector.load %arg3[%c0_5, %c0_6] : memref<16x128xf32, #tpu.memory_space<vmem>>, vector<16x128xf32>
    tpu.vector_store %arg3[%c0_5, %c0_6], %15 {strides = array<i32>} : memref<16x128xf32, #tpu.memory_space<vmem>>, vector<16x128xf32>,
    return
  }
  func.func @transform_0(%arg0: i32) -> (i32, i32) {
    %c0_i32 = arith.constant 0 : i32
    %c0_i32_0 = arith.constant 0 : i32
    return %arg0, %c0_i32 : i32, i32
  }
  func.func @transform_1(%arg0: i32) -> (i32, i32) {
    %c0_i32 = arith.constant 0 : i32
    %c0_i32_0 = arith.constant 0 : i32
    %c0_i32_1 = arith.constant 0 : i32
    return %c0_i32, %c0_i32_0 : i32, i32
  }
  func.func @transform_2(%arg0: i32) -> (i32, i32) {
    %c0_i32 = arith.constant 0 : i32
    %c0_i32_0 = arith.constant 0 : i32
    return %arg0, %c0_i32 : i32, i32
  }
}

</mosaic_0001>

<bundles_post_ra>
// kernel: tpu_custom_call.1
= control target key start
LH: loop header
LB: loop body
LE: loop exit
PB: predicated region body
PF: predicated region fallthrough
CT: control target
= control target key end

     0   :  { %7 = vsyncpa [#allocation3], 0  ;;  %s614_s0 = inlined_call_operand.vmem [shape: s32[32,2], index: 0, kind: input, shape index: {}]   ;;  %s615_s1 = inlined_call_operand.vmem [shape: f32[16,128], index: 1, kind: input, shape index: {}]   ;;  %s616_s2 = inlined_call_operand.hbm [shape: f32[32,128], index: 2, kind: output, shape index: {}]  }
   0x1   :  { %9 = vsyncpa [#allocation3 + $0x1], 0  ;;  %s506_s9 = smov 0   ;;  %s508_s10 = smov 0  }
   0x2   :  { %s510_s11 = smov 0   ;;  %s512_s12 = smov 0  }
   0x3 LB: > { %s527_s13 = sadd.s32 4294967295, %s483_s12   ;;  %s339_s14 = sadd.s32 4294967294, %s483_s12   ;;  %s483_s12 = sphi %s512_s12, %s622_s12   ;;  %s479_s11 = sphi %s510_s11, %s621_s11   ;;  %s475_s10 = sphi %s508_s10, %s620_s10   ;;  %s471_s9 = sphi %s506_s9, %s619_s9  }
   0x4   : > { %s531_s15 = sadd.s32 1, %s483_s12   ;;  %s69_s16 = sadd.s32 1, %s479_s11 }
   0x5   : > { %s66_s17 = ssub.s32 %s483_s12, %s531_s15  ;;  %p79_p0 = scmp.ne.s32.totalorder %s479_s11, %s475_s10 }
   0x6   : > { %p67_p1 = scmp.eq.s32.totalorder %s66_s17, 0  ;;  %p80_p2 = scmp.eq.s32.totalorder %s527_s13, 1 }
   0x7   : > { %p85_p3 = scmp.ne.s32.totalorder %s475_s10, %s471_s9  ;;  %p86_p4 = scmp.eq.s32.totalorder %s339_s14, 1 }
   0x8   : > { %s542_s18 = scalar_select %p67_p1, %s479_s11, %s69_s16  }
   0x9   : > { %p544_p5 = por %p80_p2, %p79_p0  ;;  %p548_p6 = por %p86_p4, %p85_p3 }
   0xa   : > { %p342_p7 = scmp.ge.s32.totalorder %s483_s12, 1  ;;  %p116_p8 = scmp.lt.s32.totalorder %s483_s12, 3 }
   0xc   : > { %p117_p9 = pnand %p342_p7, %p116_p8 }
   0xd   : > { %s344_s21 = sshll.u32 (!%p117_p9), %s527_s13, 1  ;;  %v485_v0 = vmov (!%p117_p9), 0   ;;  %v175_v3 = vld [vmem:[%s615_s1] sm:$0xff] (!%p117_p9)  ;;  %v176_v4 = vld [vmem:[%s615_s1 + $0x8] sm:$0xff] (!%p117_p9)  ;;  %v486_v5 = vmov (!%p117_p9), 1   ;;  %v145_v7 = vlaneseq (!%p117_p9)  ;;  %vm177_vm4 = vcmask (!%p117_p9), 130048  }
   0xe   : > { %120 = sbr.rel (%p117_p9) target bundleno = 393 (0x189), region = 28  ;;  %419 = vset.pattern.permute.xlu1 (!%p117_p9), %v485_v0  ;;  %417 = vset.pattern.permute.xlu0 (!%p117_p9), %v485_v0  ;;  %p139_p10 = scmp.lt.s32.totalorder (!%p117_p9), %s344_s21, 3  ;;  %v369_v6 = vpack.c.bf16 (!%p117_p9), %v176_v4, %v175_v3  ;;  %v487_v13 = vmov (!%p117_p9), 0.0  }
   0xf   : > { %v146_v8 = vand.u32 (!%p117_p9), 127, %v145_v7  ;;  %s135_s30 = sand.u32 (!%p117_p9), 1, %s475_s10   ;;  %s357_s6 = sshll.u32 (!%p117_p9), %s527_s13, 8 }
  0x10   : > { %370 = vmatprep.subr.bf16.mxu0 (!%p117_p9), %v369_v6  ;;  %s343_s3 = sshll.u32 (!%p117_p9), %s135_s30, 4  ;;  %s571_s14 = scalar_lea.hbm (!%p117_p9), %s616_s2, %s357_s6 }
  0x11   : > { %372 = vmatpush3.bf16.msra.mxu0 (!%p117_p9), %v369_v6  ;;  %s137_s4 = scalar_lea.vmem (!%p117_p9), [#allocation2], %s343_s3  ;;  %s573_s16 = scalar_lea.sflag (!%p117_p9), [#allocation3], %s135_s30 }
  0x12   : > { %s277_s5 = sshll.u32 (!%p117_p9), %s137_s4, 4  ;;  %s488_s13 = smov (!%p117_p9), [#allocation2]   ;;  %s566_s5 = int_to_ptr.vmem [resolvable:$true] %s277_s5 }
  0x13   : > { %s421_s17 = scalar_lea.vmem (!%p117_p9), %s566_s5, 256 }
  0x14   : > { %p422_p11 = scmp.ne.s32.totalorder (!%p117_p9), %s566_s5, %s421_s17 }
  0x15   : > { %s624_s21 = smov (!%p139_p10, %s344_s21), 3 }
  0x16   : > { %s345_s22 = sshll.u32 %s624_s21, 3  ;;  %p423_p12 = pnand %p422_p11, %p544_p5 }
  0x17   : > { %s142_s25 = scalar_lea.vmem %s614_s0, %s345_s22  ;;  %s425_s21 = sshll.u32 %s488_s13, 4  ;;  %s426_s21 = int_to_ptr.vmem [resolvable:$false] %s425_s21 }
  0x18   : > { %v148_v1 = vld [vmem:[%s142_s25 + $0x8] sm:$0xff]  ;;  %v147_v2 = vld [vmem:[%s142_s25] sm:$0xff]  ;;  %p424_p13 = pneg %p423_p12  ;;  %s427_s22 = scalar_lea.vmem %s426_s21, 512 }
  0x19   : > { %153 = vperm.xlu1 %419, %v148_v1   ;;  %150 = vperm.xlu0 %417, %v147_v2   ;;  %p428_p0 = scmp.lt.s32.totalorder %s566_s5, %s426_s21  ;;  %p429_p1 = scmp.lt.s32.totalorder %s427_s22, %s421_s17 }
  0x1b   : > { %p430_p2 = por %p429_p1, %p428_p0 }
  0x1d   : > { %420 = vset.pattern.permute.xlu1 %v486_v5  ;;  %418 = vset.pattern.permute.xlu0 %v486_v5  ;;  %p431_p3 = pnand %p430_p2, %p424_p13 }
  0x1e   : > { %165 = vperm.xlu1 %420, %v148_v1   ;;  %162 = vperm.xlu0 %418, %v147_v2  }
  0x98   : > { %v151_v9 = vpop.permute.xlu0 %150  ;;  %v154_v10 = vpop.permute.xlu1 %153 }
  0x99   : > { %vm155_vm0 = vcmp.eq.s32.totalorder %v146_v8, %v151_v9  ;;  %vm156_vm1 = vcmp.eq.s32.totalorder %v146_v8, %v154_v10 }
  0x9a   : > { %v346_v14 = vsel %vm155_vm0, 1.0, %v487_v13  ;;  %v347_v15 = vsel %vm156_vm1, 1.0, %v487_v13 }
  0x9d   : > { %v166_v11 = vpop.permute.xlu1 %165  ;;  %v163_v12 = vpop.permute.xlu0 %162 }
  0x9e   : > { %vm168_vm2 = vcmp.eq.s32.totalorder %v146_v8, %v166_v11  ;;  %vm167_vm3 = vcmp.eq.s32.totalorder %v146_v8, %v163_v12 }
  0x9f   : > { %v349_v16 = vsel %vm168_vm2, 1.0, %v487_v13  ;;  %v348_v17 = vsel %vm167_vm3, 1.0, %v487_v13 }
  0xa0   : > { %v174_v18 = vadd.f32 %v349_v16, %v347_v15  ;;  %v173_v19 = vadd.f32 %v348_v17, %v346_v14 }
  0xa2   : > { %366 = vmatprep.mubr.msk.f32.mxu0 %vm177_vm4, %v173_v19 }
  0xa3   : > { %367 = vmatmul.mubr.msk.f32.vlgmr.msra.gmra.mrb[0].mxu0 %vm177_vm4, %v174_v18 }
 0x176   : > { %v368_v20 = vpop.f32.mrb[0].mxu0 }
 0x177   : > { %v260_v21 = vmul.f32 0.5, %v368_v20  ;;  %v250_v22 = vpop.f32.mrb[1].mxu0 }
 0x178   : > { %v259_v23 = vmul.f32 0.5, %v250_v22 }
 0x179   : > { %262 = vst [vmem:[%s137_s4 + $0x8] sm:$0xff] %v260_v21 }
 0x17a   : > { %261 = vst [vmem:[%s137_s4] sm:$0xff] %v259_v23 }
 0x17b   : > { %434 = shalt.err (!%p431_p3)
}
 0x17c   : > { %s435_s23 = scalar_lea.hbm %s571_s14, 256  ;;  %s439_s26 = scalar_lea.hbm %s616_s2, 512 }
 0x17d   : > { %p436_p4 = scmp.ne.s32.totalorder %s571_s14, %s435_s23  ;;  %p440_p9 = scmp.lt.u32.totalorder %s571_s14, %s616_s2 }
 0x17e   : > { %p441_p10 = scmp.lt.u32.totalorder %s439_s26, %s435_s23  ;;  %p443_p12 = scmp.lt.u32.totalorder %s435_s23, %s571_s14 }
 0x17f   : > { %p437_p7 = pnand %p436_p4, %p544_p5 }
 0x180   : > { %p442_p11 = por %p441_p10, %p440_p9 }
 0x181   : > { %p438_p8 = pneg %p437_p7 }
 0x182   : > { %p444_p13 = por %p443_p12, %p442_p11 }
 0x184   : > { %p445_p0 = pnand %p444_p13, %p438_p8 }
 0x186   : > { %448 = shalt.err (!%p445_p0)
}
 0x187   : > { %s489_s29 = smov 128   ;;  %s490_s30 = smov 8  }
 0x188   : > { %373 = dma.vmem_to_hbm [thread:$0]  (%p544_p5), %s566_s5, 256, %s571_s14, %s573_s16, %s489_s29, %s489_s29, %s490_s30  }
 0x189 PF: > { %p379_p1 = scmp.ge.s32.totalorder %s483_s12, 2  ;;  %s292_s3 = sand.u32 1, %s471_s9  }
 0x18a   : > { %s293_s4 = scalar_lea.sflag [#allocation3], %s292_s3 }
 0x18b   : > { %p376_p2 = pnand %p379_p1, %p548_p6 }
 0x18d   : > { %466 = dma.done.wait (!%p376_p2), %s293_s4, 256  }
 0x18e   : > { %468 = vsyncadd (!%p376_p2), %s293_s4, 4294967040  ;;  %p12_p3 = scmp.ge.s32.totalorder %s531_s15, 4   ;;  %s619_s9 = smov %s475_s10 }
 0x18f   : > { %s620_s10 = smov %s479_s11  ;;  %s621_s11 = smov %s542_s18 }
 0x190   : > { %s622_s12 = smov %s531_s15  ;;  %14 = sbr.rel (!%p12_p3) target bundleno = 3 (0x3), region = 63 }
 0x197   :  { %298 = vsyncpa [#allocation3], 1 }
 0x198   :  { %300 = vsyncpa [#allocation3 + $0x1], 1 }

</bundles_post_ra>
